<compile_context>
chip_gen: v7x
topology: tpu7x:2x2x1
jax: 0.10.0
libtpu: 0.0.40
codegen_flags: <defaults>
</compile_context>

<pallas_src>
import jax
import jax.numpy as jnp
import numpy as np
from jax import lax
from jax.experimental import pallas as pl
from jax.experimental.pallas import tpu as pltpu


def _make_kernel(KK, CI_OPT, CI_SAR, winsize):
    def kernel(optp_ref, sarp_ref, wtp_ref, border_ref,
               w1o_ref, w1s_ref, w2_ref, b1_ref, b2_ref,
               mout_ref, sout_ref, wout_ref):
        optp = optp_ref[0]          # (CI_OPT*KK, S_tile)   raw optical patches
        sarp = sarp_ref[0]          # (CI_SAR*KK, S_tile)   raw SAR patches
        wt = wtp_ref[0]             # (CIMAX*KK,  S_tile)   mask patches (tiled per channel)

        # partial-conv masking (zero padding => padded taps stay zero, as in torch)
        m_patch = optp * wt[:CI_OPT * KK]
        s_patch = sarp * (1.0 - wt[:CI_SAR * KK])

        # fused convolutions: one MXU dot per stream, contraction = CI*K*K,
        # result laid out (CO, S_tile) -> lane dense.
        acc_m = jnp.dot(w1o_ref[...], m_patch, preferred_element_type=jnp.float32)
        acc_m = acc_m + jnp.dot(w1s_ref[...], s_patch, preferred_element_type=jnp.float32)
        acc_s = jnp.dot(w2_ref[...], sarp, preferred_element_type=jnp.float32)

        # mask statistics over the K*K taps (rows 0..KK-1 of the tiled mask patches)
        wp = wt[:KK]                                            # (KK, S_tile)
        sum_w = jnp.sum(wp, axis=0, keepdims=True)              # (1, S_tile)
        # max-pool with -inf padding semantics: border bias is 0 on valid taps, -inf on pad taps
        max_w = jnp.max(wp + border_ref[...], axis=0, keepdims=True)

        ratio = (2.0 * winsize) / (winsize + sum_w)             # (1, S_tile)

        mout_ref[0] = acc_m * ratio + b1_ref[...]               # bias (CO_OPT, 1)
        sout_ref[0] = acc_s + b2_ref[...]
        wout_ref[0] = max_w

    return kernel


def fusion_conv2d(input_opt, input_sar, weight_in, w1, b1, w2, b2,
                  kernel_size, stride=1, padding=0, dilation=1):
    """Inputs are NCHW float32 (PyTorch layout); conv weights are OIHW; returns NCHW."""
    N, CI_OPT, H, W = input_opt.shape
    CI_SAR = input_sar.shape[1]
    K, STR, PAD, DIL = kernel_size, stride, padding, dilation
    KK = K * K
    CO_OPT = w1.shape[0]
    CO_SAR = w2.shape[0]
    HO = (H + 2 * PAD - DIL * (K - 1) - 1) // STR + 1
    WO = (W + 2 * PAD - DIL * (K - 1) - 1) // STR + 1
    S = HO * WO
    S_PAD = ((S + 127) // 128) * 128                  # lane-dense flat spatial axis
    CIMAX = max(CI_OPT, CI_SAR)

    # spatial tile: keeps per-step VMEM bounded (v7x) while staying a multiple of 128
    S_TILE = S_PAD
    cap = 2048
    if S_PAD > cap:
        for t in range(cap, 127, -128):
            if S_PAD % t == 0:
                S_TILE = t
                break

    def pad_plane(x):
        return jnp.pad(x, ((0, 0), (0, 0), (PAD, PAD), (PAD, PAD)))

    def im2col(xp):
        # (N, C, Hp, Wp) -> (N, C*KK, S_PAD), row order = ci*KK + di*K + dj
        n, c = xp.shape[0], xp.shape[1]
        cols = []
        for di in range(K):
            for dj in range(K):
                h0, w0 = di * DIL, dj * DIL
                sl = lax.slice(xp, (0, 0, h0, w0),
                               (n, c, h0 + (HO - 1) * STR + 1, w0 + (WO - 1) * STR + 1),
                               (1, 1, STR, STR))                 # (N, C, HO, WO)
                cols.append(sl.reshape(n, c, 1, S))
        p = jnp.concatenate(cols, axis=2).reshape(n, c * KK, S)
        if S_PAD != S:
            p = jnp.pad(p, ((0, 0), (0, 0), (0, S_PAD - S)))
        return p

    optp = im2col(pad_plane(input_opt))                           # (N, CI_OPT*KK, S_PAD)
    sarp = im2col(pad_plane(input_sar))                           # (N, CI_SAR*KK, S_PAD)
    wp_patches = im2col(pad_plane(weight_in))                     # (N, KK, S_PAD)
    wtp = jnp.tile(wp_patches, (1, CIMAX, 1))                     # (N, CIMAX*KK, S_PAD)

    # compile-time border bias: -inf where a window tap falls into spatial padding
    ho_np = np.arange(HO).reshape(HO, 1)
    wo_np = np.arange(WO).reshape(1, WO)
    border = np.full((KK, S_PAD), -np.inf, dtype=np.float32)
    for di in range(K):
        for dj in range(K):
            hp = ho_np * STR + di * DIL
            wq = wo_np * STR + dj * DIL
            valid = (hp >= PAD) & (hp < H + PAD) & (wq >= PAD) & (wq < W + PAD)
            border[di * K + dj, :S] = np.where(valid, 0.0, -np.inf).reshape(S)
    border = jnp.asarray(border)

    # OIHW -> (CO, CI*K*K) matrices, matching the patch row ordering
    w1o_mat = w1[:, :CI_OPT].reshape(CO_OPT, CI_OPT * KK)
    w1s_mat = w1[:, CI_OPT:].reshape(CO_OPT, CI_SAR * KK)
    w2_mat = w2.reshape(CO_SAR, CI_SAR * KK)
    b1_2d = b1.reshape(CO_OPT, 1)
    b2_2d = b2.reshape(CO_SAR, 1)

    kernel = _make_kernel(KK, CI_OPT, CI_SAR, float(KK))

    grid = (N, S_PAD // S_TILE)
    bs_patch = lambda rows: pl.BlockSpec((1, rows, S_TILE), lambda n, s: (n, 0, s))
    bs_const = lambda shape: pl.BlockSpec(shape, lambda n, s: (0,) * len(shape))
    bs_border = pl.BlockSpec((KK, S_TILE), lambda n, s: (0, s))
    bs_out = lambda c: pl.BlockSpec((1, c, S_TILE), lambda n, s: (n, 0, s))

    m_flat, s_flat, w_flat = pl.pallas_call(
        kernel,
        grid=grid,
        in_specs=[
            bs_patch(CI_OPT * KK),                  # optical patches
            bs_patch(CI_SAR * KK),                  # SAR patches
            bs_patch(CIMAX * KK),                   # mask patches (channel-tiled)
            bs_border,                              # max-pool border bias (0 / -inf)
            bs_const((CO_OPT, CI_OPT * KK)),        # conv1 weight, opt half
            bs_const((CO_OPT, CI_SAR * KK)),        # conv1 weight, sar half
            bs_const((CO_SAR, CI_SAR * KK)),        # conv2 weight
            bs_const((CO_OPT, 1)),                  # conv1 bias
            bs_const((CO_SAR, 1)),                  # conv2 bias
        ],
        out_specs=[bs_out(CO_OPT), bs_out(CO_SAR), bs_out(1)],
        out_shape=[
            jax.ShapeDtypeStruct((N, CO_OPT, S_PAD), jnp.float32),
            jax.ShapeDtypeStruct((N, CO_SAR, S_PAD), jnp.float32),
            jax.ShapeDtypeStruct((N, 1, S_PAD), jnp.float32),
        ],
        compiler_params=pltpu.CompilerParams(
            dimension_semantics=("parallel", "parallel")),
    )(optp, sarp, wtp, border, w1o_mat, w1s_mat, w2_mat, b1_2d, b2_2d)

    # NCHW-flat -> NCHW (no transposes needed)
    m_out = m_flat[:, :, :S].reshape(N, CO_OPT, HO, WO)
    s_out = s_flat[:, :, :S].reshape(N, CO_SAR, HO, WO)
    w_out = w_flat[:, :, :S].reshape(N, 1, HO, WO)
    return m_out, s_out, w_out


def reference(input_opt, input_sar, weight_in, w1, b1, w2, b2,
              k, stride, padding, dilation):
    """Pure-JAX/XLA reference reproducing the PyTorch forward (NCHW)."""
    pad2 = [(padding, padding), (padding, padding)]
    strides = (stride, stride)
    rhs_dil = (dilation, dilation)

    ones = jnp.ones((1, 1, k, k), jnp.float32)
    dn_w = lax.conv_dimension_numbers(weight_in.shape, ones.shape,
                                      ('NCHW', 'OIHW', 'NCHW'))
    sum_weight = lax.conv_general_dilated(weight_in, ones, strides, pad2,
                                          rhs_dilation=rhs_dil,
                                          dimension_numbers=dn_w)

    m_input = input_opt * weight_in
    s_input = input_sar * (1.0 - weight_in)
    x = jnp.concatenate([m_input, s_input], axis=1)
    dn1 = lax.conv_dimension_numbers(x.shape, w1.shape, ('NCHW', 'OIHW', 'NCHW'))
    m_out = lax.conv_general_dilated(x, w1, strides, pad2, rhs_dilation=rhs_dil,
                                     dimension_numbers=dn1) + b1.reshape(1, -1, 1, 1)

    winsize = k * k
    ratio = 2.0 * winsize / (winsize + sum_weight)
    bias_view = b1.reshape(1, -1, 1, 1)
    m_out = (m_out - bias_view) * ratio + bias_view

    dn2 = lax.conv_dimension_numbers(input_sar.shape, w2.shape, ('NCHW', 'OIHW', 'NCHW'))
    s_out = lax.conv_general_dilated(input_sar, w2, strides, pad2, rhs_dilation=rhs_dil,
                                     dimension_numbers=dn2) + b2.reshape(1, -1, 1, 1)

    weight = lax.reduce_window(weight_in, -jnp.inf, lax.max,
                               (1, 1, k, k), (1, 1, stride, stride),
                               [(0, 0), (0, 0), (padding, padding), (padding, padding)],
                               window_dilation=(1, 1, dilation, dilation))
    return m_out, s_out, weight


if __name__ == "__main__":
    key = jax.random.PRNGKey(0)
    N, CI_OPT, CI_SAR, H, W = 2, 4, 2, 16, 16
    CO_OPT, CO_SAR = 4, 2
    K, STR, PAD, DIL = 3, 1, 1, 1

    k1, k2, k3, k4, k5, k6, k7 = jax.random.split(key, 7)
    input_opt = jax.random.normal(k1, (N, CI_OPT, H, W), jnp.float32)
    input_sar = jax.random.normal(k2, (N, CI_SAR, H, W), jnp.float32)
    weight_in = jax.random.uniform(k3, (N, 1, H, W), jnp.float32)  # mask-like, 1 channel

    # synthetic parameters (torch Conv2d shapes: OIHW weight, (O,) bias)
    w1 = 0.1 * jax.random.normal(k4, (CO_OPT, CI_OPT + CI_SAR, K, K), jnp.float32)
    b1 = 0.1 * jax.random.normal(k5, (CO_OPT,), jnp.float32)
    w2 = 0.1 * jax.random.normal(k6, (CO_SAR, CI_SAR, K, K), jnp.float32)
    b2 = 0.1 * jax.random.normal(k7, (CO_SAR,), jnp.float32)

    m_out, s_out, w_out = fusion_conv2d(input_opt, input_sar, weight_in,
                                        w1, b1, w2, b2, K, STR, PAD, DIL)
    jax.block_until_ready((m_out, s_out, w_out))

    m_ref, s_ref, w_ref = reference(input_opt, input_sar, weight_in,
                                    w1, b1, w2, b2, K, STR, PAD, DIL)

    assert m_out.shape == m_ref.shape and s_out.shape == s_ref.shape and w_out.shape == w_ref.shape
    assert np.allclose(np.asarray(m_out), np.asarray(m_ref), atol=5e-3, rtol=5e-3)
    assert np.allclose(np.asarray(s_out), np.asarray(s_ref), atol=5e-3, rtol=5e-3)
    assert np.allclose(np.asarray(w_out), np.asarray(w_ref), atol=5e-3, rtol=5e-3)

    print("KERNEL_OK")
</pallas_src>

<mosaic_0001>
module attributes {stable_mosaic.version = 11 : i64} {
  func.func @kernel(%arg0: i32, %arg1: i32, %arg2: memref<1x36x256xf32, #tpu.memory_space<vmem>>, %arg3: memref<1x18x256xf32, #tpu.memory_space<vmem>>, %arg4: memref<1x36x256xf32, #tpu.memory_space<vmem>>, %arg5: memref<9x256xf32, #tpu.memory_space<vmem>>, %arg6: memref<4x36xf32, #tpu.memory_space<vmem>>, %arg7: memref<4x18xf32, #tpu.memory_space<vmem>>, %arg8: memref<2x18xf32, #tpu.memory_space<vmem>>, %arg9: memref<4x1xf32, #tpu.memory_space<vmem>>, %arg10: memref<2x1xf32, #tpu.memory_space<vmem>>, %arg11: memref<1x4x256xf32, #tpu.memory_space<vmem>>, %arg12: memref<1x2x256xf32, #tpu.memory_space<vmem>>, %arg13: memref<1x1x256xf32, #tpu.memory_space<vmem>>) attributes {dimension_semantics = [#tpu.dimension_semantics<parallel>, #tpu.dimension_semantics<parallel>], iteration_bounds = array<i64: 2, 1>, scalar_prefetch = 0 : i64, scratch_operands = 0 : i64, tpu.core_type = #tpu.core_type<tc>, window_params = [{transform_indices = @transform_0, window_bounds = array<i64: 1, 36, 256>}, {transform_indices = @transform_1, window_bounds = array<i64: 1, 18, 256>}, {transform_indices = @transform_2, window_bounds = array<i64: 1, 36, 256>}, {transform_indices = @transform_3, window_bounds = array<i64: 9, 256>}, {pipeline_mode = #tpu.pipeline_mode<synchronous>, transform_indices = @transform_4, window_bounds = array<i64: 4, 36>}, {pipeline_mode = #tpu.pipeline_mode<synchronous>, transform_indices = @transform_5, window_bounds = array<i64: 4, 18>}, {pipeline_mode = #tpu.pipeline_mode<synchronous>, transform_indices = @transform_6, window_bounds = array<i64: 2, 18>}, {pipeline_mode = #tpu.pipeline_mode<synchronous>, transform_indices = @transform_7, window_bounds = array<i64: 4, 1>}, {pipeline_mode = #tpu.pipeline_mode<synchronous>, transform_indices = @transform_8, window_bounds = array<i64: 2, 1>}, {transform_indices = @transform_9, window_bounds = array<i64: 1, 4, 256>}, {transform_indices = @transform_10, window_bounds = array<i64: 1, 2, 256>}, {transform_indices = @transform_11, window_bounds = array<i64: 1, 1, 256>}]} {
    %c0 = arith.constant 0 : index
    %c0_0 = arith.constant 0 : index
    %c0_1 = arith.constant 0 : index
    %0 = vector.load %arg2[%c0, %c0_0, %c0_1] : memref<1x36x256xf32, #tpu.memory_space<vmem>>, vector<1x36x256xf32>
    %1 = vector.shape_cast %0 : vector<1x36x256xf32> to vector<36x256xf32>
    %c0_2 = arith.constant 0 : index
    %c0_3 = arith.constant 0 : index
    %c0_4 = arith.constant 0 : index
    %2 = vector.load %arg3[%c0_2, %c0_3, %c0_4] : memref<1x18x256xf32, #tpu.memory_space<vmem>>, vector<1x18x256xf32>
    %3 = vector.shape_cast %2 : vector<1x18x256xf32> to vector<18x256xf32>
    %c0_5 = arith.constant 0 : index
    %c0_6 = arith.constant 0 : index
    %c0_7 = arith.constant 0 : index
    %4 = vector.load %arg4[%c0_5, %c0_6, %c0_7] : memref<1x36x256xf32, #tpu.memory_space<vmem>>, vector<1x36x256xf32>
    %5 = vector.shape_cast %4 : vector<1x36x256xf32> to vector<36x256xf32>
    %6 = arith.mulf %1, %5 : vector<36x256xf32>
    %7 = vector.extract_strided_slice %5 {offsets = [0, 0], sizes = [18, 256], strides = [1, 1]} : vector<36x256xf32> to vector<18x256xf32>
    %cst = arith.constant 1.000000e+00 : f32
    %8 = vector.broadcast %cst : f32 to vector<18x256xf32>
    %9 = arith.subf %8, %7 : vector<18x256xf32>
    %10 = arith.mulf %3, %9 : vector<18x256xf32>
    %c0_8 = arith.constant 0 : index
    %c0_9 = arith.constant 0 : index
    %11 = vector.load %arg6[%c0_8, %c0_9] : memref<4x36xf32, #tpu.memory_space<vmem>>, vector<4x36xf32>
    %cst_10 = arith.constant dense<0.000000e+00> : vector<4x256xf32>
    %12 = tpu.matmul %11, %6, %cst_10 {dimension_numbers = #tpu.dot_dimension_numbers<[1], [0], [0], [1], [0, 0, 1, 1], [], []>} : vector<4x36xf32>, vector<36x256xf32>, vector<4x256xf32> -> vector<4x256xf32>
    %c0_11 = arith.constant 0 : index
    %c0_12 = arith.constant 0 : index
    %13 = vector.load %arg7[%c0_11, %c0_12] : memref<4x18xf32, #tpu.memory_space<vmem>>, vector<4x18xf32>
    %cst_13 = arith.constant dense<0.000000e+00> : vector<4x256xf32>
    %14 = tpu.matmul %13, %10, %cst_13 {dimension_numbers = #tpu.dot_dimension_numbers<[1], [0], [0], [1], [0, 0, 1, 1], [], []>} : vector<4x18xf32>, vector<18x256xf32>, vector<4x256xf32> -> vector<4x256xf32>
    %15 = arith.addf %12, %14 : vector<4x256xf32>
    %c0_14 = arith.constant 0 : index
    %c0_15 = arith.constant 0 : index
    %16 = vector.load %arg8[%c0_14, %c0_15] : memref<2x18xf32, #tpu.memory_space<vmem>>, vector<2x18xf32>
    %cst_16 = arith.constant dense<0.000000e+00> : vector<2x256xf32>
    %17 = tpu.matmul %16, %3, %cst_16 {dimension_numbers = #tpu.dot_dimension_numbers<[1], [0], [0], [1], [0, 0, 1, 1], [], []>} : vector<2x18xf32>, vector<18x256xf32>, vector<2x256xf32> -> vector<2x256xf32>
    %18 = vector.extract_strided_slice %5 {offsets = [0, 0], sizes = [9, 256], strides = [1, 1]} : vector<36x256xf32> to vector<9x256xf32>
    %cst_17 = arith.constant dense<0.000000e+00> : vector<256xf32>
    %19 = vector.multi_reduction <add>, %18, %cst_17 [0] : vector<9x256xf32> to vector<256xf32>
    %20 = vector.shape_cast %19 : vector<256xf32> to vector<1x256xf32>
    %c0_18 = arith.constant 0 : index
    %c0_19 = arith.constant 0 : index
    %21 = vector.load %arg5[%c0_18, %c0_19] : memref<9x256xf32, #tpu.memory_space<vmem>>, vector<9x256xf32>
    %22 = arith.addf %18, %21 : vector<9x256xf32>
    %cst_20 = arith.constant dense<0xFF800000> : vector<256xf32>
    %23 = vector.multi_reduction <maximumf>, %22, %cst_20 [0] : vector<9x256xf32> to vector<256xf32>
    %24 = vector.shape_cast %23 : vector<256xf32> to vector<1x256xf32>
    %cst_21 = arith.constant 9.000000e+00 : f32
    %25 = vector.broadcast %cst_21 : f32 to vector<1x256xf32>
    %26 = arith.addf %25, %20 : vector<1x256xf32>
    %cst_22 = arith.constant 1.800000e+01 : f32
    %27 = vector.broadcast %cst_22 : f32 to vector<1x256xf32>
    %28 = arith.divf %27, %26 : vector<1x256xf32>
    %29 = vector.broadcast %28 : vector<1x256xf32> to vector<4x256xf32>
    %30 = arith.mulf %15, %29 : vector<4x256xf32>
    %c0_23 = arith.constant 0 : index
    %c0_24 = arith.constant 0 : index
    %31 = vector.load %arg9[%c0_23, %c0_24] : memref<4x1xf32, #tpu.memory_space<vmem>>, vector<4x1xf32>
    %32 = vector.broadcast %31 : vector<4x1xf32> to vector<4x256xf32>
    %33 = arith.addf %30, %32 : vector<4x256xf32>
    %c0_25 = arith.constant 0 : index
    %c0_26 = arith.constant 0 : index
    %c0_27 = arith.constant 0 : index
    %34 = vector.load %arg11[%c0_25, %c0_26, %c0_27] : memref<1x4x256xf32, #tpu.memory_space<vmem>>, vector<1x4x256xf32>
    %35 = vector.shape_cast %34 : vector<1x4x256xf32> to vector<4x256xf32>
    %36 = vector.shape_cast %33 : vector<4x256xf32> to vector<1x4x256xf32>
    tpu.vector_store %arg11[%c0_25, %c0_26, %c0_27], %36 {strides = array<i32>} : memref<1x4x256xf32, #tpu.memory_space<vmem>>, vector<1x4x256xf32>,
    %c0_28 = arith.constant 0 : index
    %c0_29 = arith.constant 0 : index
    %37 = vector.load %arg10[%c0_28, %c0_29] : memref<2x1xf32, #tpu.memory_space<vmem>>, vector<2x1xf32>
    %38 = vector.broadcast %37 : vector<2x1xf32> to vector<2x256xf32>
    %39 = arith.addf %17, %38 : vector<2x256xf32>
    %c0_30 = arith.constant 0 : index
    %c0_31 = arith.constant 0 : index
    %c0_32 = arith.constant 0 : index
    %40 = vector.load %arg12[%c0_30, %c0_31, %c0_32] : memref<1x2x256xf32, #tpu.memory_space<vmem>>, vector<1x2x256xf32>
    %41 = vector.shape_cast %40 : vector<1x2x256xf32> to vector<2x256xf32>
    %42 = vector.shape_cast %39 : vector<2x256xf32> to vector<1x2x256xf32>
    tpu.vector_store %arg12[%c0_30, %c0_31, %c0_32], %42 {strides = array<i32>} : memref<1x2x256xf32, #tpu.memory_space<vmem>>, vector<1x2x256xf32>,
    %c0_33 = arith.constant 0 : index
    %c0_34 = arith.constant 0 : index
    %c0_35 = arith.constant 0 : index
    %43 = vector.load %arg13[%c0_33, %c0_34, %c0_35] : memref<1x1x256xf32, #tpu.memory_space<vmem>>, vector<1x1x256xf32>
    %44 = vector.shape_cast %43 : vector<1x1x256xf32> to vector<1x256xf32>
    %45 = vector.shape_cast %24 : vector<1x256xf32> to vector<1x1x256xf32>
    tpu.vector_store %arg13[%c0_33, %c0_34, %c0_35], %45 {strides = array<i32>} : memref<1x1x256xf32, #tpu.memory_space<vmem>>, vector<1x1x256xf32>,
    return
  }
  func.func @transform_0(%arg0: i32, %arg1: i32) -> (i32, i32, i32) {
    %c0_i32 = arith.constant 0 : i32
    %c0_i32_0 = arith.constant 0 : i32
    return %arg0, %c0_i32, %arg1 : i32, i32, i32
  }
  func.func @transform_1(%arg0: i32, %arg1: i32) -> (i32, i32, i32) {
    %c0_i32 = arith.constant 0 : i32
    %c0_i32_0 = arith.constant 0 : i32
    return %arg0, %c0_i32, %arg1 : i32, i32, i32
  }
  func.func @transform_2(%arg0: i32, %arg1: i32) -> (i32, i32, i32) {
    %c0_i32 = arith.constant 0 : i32
    %c0_i32_0 = arith.constant 0 : i32
    return %arg0, %c0_i32, %arg1 : i32, i32, i32
  }
  func.func @transform_3(%arg0: i32, %arg1: i32) -> (i32, i32) {
    %c0_i32 = arith.constant 0 : i32
    %c0_i32_0 = arith.constant 0 : i32
    return %c0_i32, %arg1 : i32, i32
  }
  func.func @transform_4(%arg0: i32, %arg1: i32) -> (i32, i32) {
    %c0_i32 = arith.constant 0 : i32
    %c0_i32_0 = arith.constant 0 : i32
    %c0_i32_1 = arith.constant 0 : i32
    return %c0_i32, %c0_i32_0 : i32, i32
  }
  func.func @transform_5(%arg0: i32, %arg1: i32) -> (i32, i32) {
    %c0_i32 = arith.constant 0 : i32
    %c0_i32_0 = arith.constant 0 : i32
    %c0_i32_1 = arith.constant 0 : i32
    return %c0_i32, %c0_i32_0 : i32, i32
  }
  func.func @transform_6(%arg0: i32, %arg1: i32) -> (i32, i32) {
    %c0_i32 = arith.constant 0 : i32
    %c0_i32_0 = arith.constant 0 : i32
    %c0_i32_1 = arith.constant 0 : i32
    return %c0_i32, %c0_i32_0 : i32, i32
  }
  func.func @transform_7(%arg0: i32, %arg1: i32) -> (i32, i32) {
    %c0_i32 = arith.constant 0 : i32
    %c0_i32_0 = arith.constant 0 : i32
    %c0_i32_1 = arith.constant 0 : i32
    return %c0_i32, %c0_i32_0 : i32, i32
  }
  func.func @transform_8(%arg0: i32, %arg1: i32) -> (i32, i32) {
    %c0_i32 = arith.constant 0 : i32
    %c0_i32_0 = arith.constant 0 : i32
    %c0_i32_1 = arith.constant 0 : i32
    return %c0_i32, %c0_i32_0 : i32, i32
  }
  func.func @transform_9(%arg0: i32, %arg1: i32) -> (i32, i32, i32) {
    %c0_i32 = arith.constant 0 : i32
    %c0_i32_0 = arith.constant 0 : i32
    return %arg0, %c0_i32, %arg1 : i32, i32, i32
  }
  func.func @transform_10(%arg0: i32, %arg1: i32) -> (i32, i32, i32) {
    %c0_i32 = arith.constant 0 : i32
    %c0_i32_0 = arith.constant 0 : i32
    return %arg0, %c0_i32, %arg1 : i32, i32, i32
  }
  func.func @transform_11(%arg0: i32, %arg1: i32) -> (i32, i32, i32) {
    %c0_i32 = arith.constant 0 : i32
    %c0_i32_0 = arith.constant 0 : i32
    return %arg0, %c0_i32, %arg1 : i32, i32, i32
  }
}

</mosaic_0001>

<bundles_post_ra>
// kernel: tpu_custom_call.1
= control target key start
LH: loop header
LB: loop body
LE: loop exit
PB: predicated region body
PF: predicated region fallthrough
CT: control target
= control target key end

     0   :  { %s1813_s0 = inlined_call_operand.vmem [shape: f32[2,36,256], index: 0, kind: input, shape index: {}]   ;;  %s1814_s1 = inlined_call_operand.vmem [shape: f32[2,18,256], index: 1, kind: input, shape index: {}]   ;;  %s1815_s2 = inlined_call_operand.vmem [shape: f32[2,36,256], index: 2, kind: input, shape index: {}]   ;;  %s1816_s3 = inlined_call_operand.vmem [shape: f32[9,256], index: 3, kind: input, shape index: {}]   ;;  %s1817_s4 = inlined_call_operand.vmem [shape: f32[4,36], index: 4, kind: input, shape index: {}]   ;;  %s1818_s5 = inlined_call_operand.vmem [shape: f32[4,18], index: 5, kind: input, shape index: {}]   ;;  %s1819_s6 = inlined_call_operand.vmem [shape: f32[2,18], index: 6, kind: input, shape index: {}]   ;;  %s1820_s7 = inlined_call_operand.vmem [shape: f32[4,1], index: 7, kind: input, shape index: {}]   ;;  %s1821_s8 = inlined_call_operand.vmem [shape: f32[2,1], index: 8, kind: input, shape index: {}]   ;;  %s1822_s9 = inlined_call_operand.hbm [shape: f32[2,4,256], index: 9, kind: output, shape index: {0}]   ;;  %s1823_s10 = inlined_call_operand.hbm [shape: f32[2,2,256], index: 10, kind: output, shape index: {1}]   ;;  %s1824_s11 = inlined_call_operand.hbm [shape: f32[2,1,256], index: 11, kind: output, shape index: {2}]  }
   0x1   :  { %1829 = sst [smem:[#allocation12_spill]] %s1813_s0 }
   0x2   :  { %1830 = sst [smem:[#allocation13_spill]] %s1814_s1 }
   0x3   :  { %1831 = sst [smem:[#allocation14_spill]] %s1815_s2 }
   0x4   :  { %1832 = sst [smem:[#allocation15_spill]] %s1816_s3 }
   0x5   :  { %1833 = sst [smem:[#allocation16_spill]] %s1817_s4 }
   0x6   :  { %1834 = sst [smem:[#allocation17_spill]] %s1818_s5 }
   0x7   :  { %17 = vsyncpa [#allocation3], 0 }
   0x8   :  { %19 = vsyncpa [#allocation3 + $0x1], 0 }
   0x9   :  { %20 = vsyncpa [#allocation5], 0 }
   0xa   :  { %22 = vsyncpa [#allocation5 + $0x1], 0  ;;  %s1520_s17 = smov 0   ;;  %s1522_s18 = smov 0  }
   0xb   :  { %s1524_s19 = smov 0   ;;  %s1526_s20 = smov 0  }
   0xc   :  { %s1528_s21 = smov 0   ;;  %s1530_s22 = smov 0  }
   0xd LB: > { %1835 = sst [smem:[#allocation9_spill]] %s1448_s21  ;;  %s1826_s23 = sadd.s32 4294967295, %s1452_s22   ;;  %s1452_s22 = sphi %s1530_s22, %s28_s22   ;;  %s1448_s21 = sphi %s1528_s21, %s1850_s21   ;;  %s1444_s20 = sphi %s1526_s20, %s1849_s20   ;;  %s1440_s19 = sphi %s1524_s19, %s1853_s19   ;;  %s1436_s18 = sphi %s1522_s18, %s1852_s18   ;;  %s1432_s17 = sphi %s1520_s17, %s1851_s17  }
   0xe   : > { %s1825_s24 = sadd.s32 4294967294, %s1452_s22   ;;  %s40_s25 = sadd.s32 1, %s1448_s21 }
   0xf   : > { %s264_s26 = sadd.s32 1, %s1440_s19  ;;  %p42_p0 = scmp.ge.s32.totalorder %s40_s25, 2 }
  0x10   : > { %p274_p1 = scmp.ne.s32.totalorder %s1440_s19, %s1436_s18  ;;  %p275_p2 = scmp.eq.s32.totalorder %s1826_s23, 1 }
  0x11   : > { %p280_p3 = scmp.ne.s32.totalorder %s1436_s18, %s1432_s17  ;;  %s1855_s25 = smov (%p42_p0, %s40_s25), 0 }
  0x12   : > { %1836 = sst [smem:[#allocation10_spill]] %s1855_s25  ;;  %p1562_p4 = por %p275_p2, %p274_p1 }
  0x13   : > { %p281_p5 = scmp.eq.s32.totalorder %s1825_s24, 1  ;;  %s259_s28 = ssub.s32 %s1448_s21, %s1855_s25 }
  0x14   : > { %p1190_p6 = scmp.ge.s32.totalorder %s1452_s22, 1  ;;  %p262_p7 = scmp.eq.s32.totalorder %s259_s28, 0 }
  0x15   : > { %p1571_p8 = por %p281_p5, %p280_p3  ;;  %p418_p9 = scmp.lt.s32.totalorder %s1452_s22, 3 }
  0x16   : > { %s1577_s30 = scalar_select %p262_p7, %s1440_s19, %s264_s26  }
  0x17   : > { %p419_p10 = pnand %p1190_p6, %p418_p9 }
  0x18   : > { %1839 = sst [smem:[#allocation11_spill]] %s1577_s30  ;;  %p496_p11 = scmp.lt.s32.totalorder (!%p419_p10), %s1444_s20, 1  ;;  %v1454_v0 = vmov (!%p419_p10), 0.0   ;;  %v811_v1 = vld [vmem:[%s1821_s8] sm:$0x3] (!%p419_p10)  ;;  %v1455_v2 = vmov (!%p419_p10), 0  }
  0x19   : > { %422 = sbr.rel (%p419_p10) target bundleno = 337 (0x151), region = 56  ;;  %659 = vmatprep.mubr.f32.mxu1 (!%p419_p10), %v1454_v0  ;;  %741 = vmatprep.mubr.f32.mxu0 (!%p419_p10), %v1454_v0  ;;  %s1840_s3 = sld [smem:[#allocation15_spill]] (!%p419_p10)  ;;  %vm749_vm0 = vcmask (!%p419_p10), 1040384   ;;  %v798_v6 = vld [vmem:[%s1820_s7] sm:$0xf] (!%p419_p10)  ;;  %vm588_vm1 = vcmask (!%p419_p10), 1041408  }
  0x1a   : > { %1309 = vset.pattern.permute.xlu0 (!%p419_p10), %v1455_v2  ;;  %s1841_s0 = sld [smem:[#allocation12_spill]] (!%p419_p10)  ;;  %s1842_s2 = sld [smem:[#allocation14_spill]] (!%p419_p10)  ;;  %vm670_vm2 = vcmask (!%p419_p10), 1043456   ;;  %vm584_vm3 = vcmask (!%p419_p10), 146432   ;;  %vm666_vm4 = vcmask (!%p419_p10), 293888  }
  0x1b   : > { %814 = vperm.xlu0 (!%p419_p10), %1309, %v811_v1   ;;  %s1843_s1 = sld [smem:[#allocation13_spill]] (!%p419_p10)  ;;  %s1844_s5 = sld [smem:[#allocation17_spill]] (!%p419_p10) }
  0x1c   : > { %s1845_s4 = sld [smem:[#allocation16_spill]] (!%p419_p10)  ;;  %s1679_s21 = sand.u32 (!%p419_p10), 1, %s1436_s18  }
  0x1d   : > { %s1193_s30 = sshll.u32 (!%p419_p10), %s1679_s21, 1  ;;  %s1191_s14 = sshll.u32 (!%p419_p10), %s1679_s21, 3 }
  0x1e   : > { %s1219_s16 = sshll.u32 (!%p419_p10), %s1444_s20, 6 }
  0x1f   : > { %v767_v3 = vld [vmem:[%s1840_s3 + $0x8] sm:$0xff] (!%p419_p10)  ;;  %v769_v4 = vld [vmem:[%s1840_s3 + $0x18] sm:$0x1] (!%p419_p10)  ;;  %v766_v5 = vld [vmem:[%s1840_s3] sm:$0xff] (!%p419_p10)  ;;  %801 = vperm.xlu0 (!%p419_p10), %1309, %v798_v6   ;;  %s1699_s23 = scalar_lea.hbm (!%p419_p10), %s1823_s10, %s1219_s16 }
  0x20   : > { %s497_s12 = scalar_select %p496_p11, %s1444_s20, 1  ;;  %v768_v21 = vld [vmem:[%s1840_s3 + $0x10] sm:$0x1] }
  0x22   : > { %s1239_s15 = smul.u32 80, %s497_s12 }
  0x23   : > { %s1240_s28 = smul.u32 48, %s497_s12  ;;  %s1846_s12 = sadd.s32 4294967295, %s1452_s22  }
  0x24   : > { %s1592_s25 = scalar_lea.vmem %s1841_s0, %s1239_s15  ;;  %s1597_s13 = scalar_lea.vmem %s1842_s2, %s1239_s15 }
  0x25   : > { %v535_v7 = vld [vmem:[%s1592_s25 + $0x8] sm:$0xff]  ;;  %v537_v8 = vld [vmem:[%s1592_s25 + $0x18] sm:$0xff]  ;;  %s1614_s26 = scalar_lea.vmem %s1843_s1, %s1240_s28  ;;  %v534_v13 = vld [vmem:[%s1592_s25] sm:$0xff]  ;;  %s1682_s15 = scalar_lea.vmem [#allocation6], %s1193_s30 }
  0x26   : > { %v551_v9 = vld [vmem:[%s1597_s13 + $0x8] sm:$0xff]  ;;  %v553_v10 = vld [vmem:[%s1597_s13 + $0x18] sm:$0xff]  ;;  %v536_v14 = vld [vmem:[%s1592_s25 + $0x10] sm:$0xff]  ;;  %s1693_s28 = sand.u32 1, %s1846_s12   ;;  %s1218_s12 = sshll.u32 %s1444_s20, 7 }
  0x27   : > { %v561_v11 = vmul.f32 %v551_v9, %v535_v7  ;;  %v771_v12 = vadd.f32 %v767_v3, %v551_v9  ;;  %v571_v15 = vsub.f32 1.0, %v551_v9  ;;  %v563_v16 = vmul.f32 %v553_v10, %v537_v8  ;;  %v550_v19 = vld [vmem:[%s1597_s13] sm:$0xff]  ;;  %v552_v20 = vld [vmem:[%s1597_s13 + $0x10] sm:$0xff]  ;;  %v1629_v27 = vld [vmem:[%s1614_s26 + $0x8] sm:$0xff]  ;;  %s480_s0 = scalar_lea.vmem [#allocation2], %s1191_s14  ;;  %s1220_s2 = sshll.u32 %s1444_s20, 5 }
  0x28   : > { %v758_v17 = vsel %vm749_vm0, %v553_v10, 0.0  ;;  %v773_v18 = vadd.f32 %v769_v4, %v553_v10  ;;  %v573_v22 = vsub.f32 1.0, %v553_v10  ;;  %v560_v24 = vmul.f32 %v550_v19, %v534_v13  ;;  %v1632_v28 = vld [vmem:[%s1614_s26 + $0x18] sm:$0xff]  ;;  %v544_v33 = vld [vmem:[%s1614_s26] sm:$0xff]  ;;  %v546_v37 = vld [vmem:[%s1614_s26 + $0x10] sm:$0xff]  ;;  %s959_s1 = sshll.u32 %s480_s0, 4  ;;  %s1716_s20 = scalar_lea.hbm %s1824_s11, %s1220_s2  ;;  %s1711_s1 = int_to_ptr.vmem [resolvable:$true] %s959_s1 }
  0x29   : > { %v1625_v23 = vadd.f32 %v758_v17, %v551_v9  ;;  %v562_v25 = vmul.f32 %v552_v20, %v536_v14  ;;  %v750_v26 = vsel %vm749_vm0, %v552_v20, 0.0  ;;  %v1225_v29 = vpack.c.bf16 %v563_v16, %v561_v11  ;;  %v539_v38 = vld [vmem:[%s1592_s25 + $0x28] sm:$0xff]  ;;  %v541_v39 = vld [vmem:[%s1592_s25 + $0x38] sm:$0xff]  ;;  %v538_v45 = vld [vmem:[%s1592_s25 + $0x20] sm:$0xff]  ;;  %s991_s3 = sshll.u32 %s1682_s15, 4  ;;  %s1718_s3 = int_to_ptr.vmem [resolvable:$true] %s991_s3 }
  0x2a   : > { %v782_v30 = vsel %vm749_vm0, %v773_v18, -inf  ;;  %v1635_v31 = vadd.f32 %v750_v26, %v550_v19  ;;  %v770_v32 = vadd.f32 %v766_v5, %v550_v19  ;;  %v772_v36 = vadd.f32 %v768_v21, %v552_v20  ;;  %v555_v43 = vld [vmem:[%s1597_s13 + $0x28] sm:$0xff]  ;;  %v557_v44 = vld [vmem:[%s1597_s13 + $0x38] sm:$0xff]  ;;  %v540_v48 = vld [vmem:[%s1592_s25 + $0x30] sm:$0xff] }
  0x2b   : > { %v1638_v34 = vmax.f32 %v771_v12, %v782_v30  ;;  %v1227_v35 = vpack.c.bf16 %v562_v25, %v560_v24  ;;  %1226 = vmatprep.subr.bf16.mxu0 %v1225_v29  ;;  %v577_v40 = vmul.f32 %v571_v15, %v1629_v27  ;;  %v579_v41 = vmul.f32 %v573_v22, %v1632_v28  ;;  %v554_v49 = vld [vmem:[%s1597_s13 + $0x20] sm:$0xff]  ;;  %v556_v50 = vld [vmem:[%s1597_s13 + $0x30] sm:$0xff]  ;;  %v549_v57 = vld [vmem:[%s1614_s26 + $0x28] sm:$0x3] }
  0x2c   : > { %v570_v42 = vsub.f32 1.0, %v550_v19  ;;  %v774_v46 = vsel %vm749_vm0, %v772_v36, -inf  ;;  %v572_v47 = vsub.f32 1.0, %v552_v20  ;;  %v565_v55 = vmul.f32 %v555_v43, %v539_v38  ;;  %v543_v58 = vld [vmem:[%s1592_s25 + $0x48] sm:$0xf] }
  0x2d   : > { %1228 = vmatpush1.bf16.msra.mxu0 %v1227_v35  ;;  %v775_v51 = vmax.f32 %v770_v32, %v774_v46  ;;  %v1221_v52 = vpack.c.bf16 %v579_v41, %v577_v40  ;;  %v567_v56 = vmul.f32 %v557_v44, %v541_v39  ;;  %v559_v59 = vld [vmem:[%s1597_s13 + $0x48] sm:$0xf]  ;;  %v575_v60 = vsub.f32 1.0, %v555_v43  ;;  %v548_v63 = vld [vmem:[%s1614_s26 + $0x20] sm:$0x3]  ;;  %s1192_s26 = sshll.u32 %s1679_s21, 2 }
  0x2e   : > { %v576_v53 = vmul.f32 %v570_v42, %v544_v33  ;;  %v578_v54 = vmul.f32 %v572_v47, %v546_v37  ;;  %v564_v61 = vmul.f32 %v554_v49, %v538_v45  ;;  %v566_v62 = vmul.f32 %v556_v50, %v540_v48  ;;  %v542_v7 = vld [vmem:[%s1592_s25 + $0x40] sm:$0xf]  ;;  %s487_s24 = scalar_lea.vmem [#allocation4], %s1192_s26  ;;  %s1709_s26 = scalar_lea.hbm %s1822_s9, %s1218_s12 }
  0x2f   : > { %1222 = vmatprep.subr.bf16.mxu1 %v1221_v52  ;;  %v1229_v2 = vpack.c.bf16 %v567_v56, %v565_v55  ;;  %v574_v3 = vsub.f32 1.0, %v554_v49  ;;  %v581_v5 = vmul.f32 %v575_v60, %v549_v57  ;;  %v569_v6 = vmul.f32 %v559_v59, %v543_v58  ;;  %v558_v8 = vld [vmem:[%s1597_s13 + $0x40] sm:$0xf]  ;;  %s975_s30 = sshll.u32 %s487_s24, 4  ;;  %s1704_s30 = int_to_ptr.vmem [resolvable:$true] %s975_s30 }
  0x30   : > { %v1223_v1 = vpack.c.bf16 %v578_v54, %v576_v53  ;;  %v1231_v4 = vpack.c.bf16 %v566_v62, %v564_v61  ;;  %v1233_v10 = vpack.c.bf16 %v1632_v28, %v1629_v27  ;;  %v1235_v11 = vpack.c.bf16 %v546_v37, %v544_v33  ;;  %v583_v12 = vld [vmem:[%s1844_s5] sm:$0xf]  ;;  %s1314_s25 = scalar_lea.vmem %s1704_s30, 64 }
  0x31   : > { %1230 = vmatprep.subr.bf16.mxu0 %v1229_v2  ;;  %v580_v9 = vmul.f32 %v574_v3, %v548_v63  ;;  %v568_v13 = vmul.f32 %v558_v8, %v542_v7  ;;  %v582_v14 = vld [vmem:[%s1845_s4] sm:$0xf]  ;;  %v784_v16 = vrot.slane %v1638_v34, 4  ;;  %v776_v17 = vrot.slane %v775_v51, 4  ;;  %p1315_p12 = scmp.ne.s32.totalorder %s1704_s30, %s1314_s25  ;;  %s1457_s4 = smov [#allocation4]  }
  0x32   : > { %1224 = vmatpush1.bf16.msra.mxu1 %v1223_v1  ;;  %1232 = vmatpush1.bf16.msra.mxu0 %v1231_v4  ;;  %v748_v15 = vld [vmem:[%s1819_s6] sm:$0x3]  ;;  %v1456_v26 = vmov 1966171168   ;;  %v915_v28 = vlaneseq  ;;  %v752_v38 = vrot.slane %v1635_v31, 4  ;;  %v760_v39 = vrot.slane %v1625_v23, 4 }
  0x33   : > { %1197 = vmatprep.subr.msk.mxu1 %vm588_vm1, %v581_v5  ;;  %1200 = vmatprep.subr.msk.mxu0 %vm670_vm2, %v569_v6  ;;  %v785_v18 = vmax.f32 %v1638_v34, %v784_v16  ;;  %v777_v19 = vmax.f32 %v775_v51, %v776_v17  ;;  %v913_v27 = vunpack.c.l.s4 %v1456_v26  ;;  %p1316_p13 = pnand %p1315_p12, %p1562_p4  ;;  %s1318_s5 = sshll.u32 %s1457_s4, 4  ;;  %s1319_s5 = int_to_ptr.vmem [resolvable:$false] %s1318_s5 }
  0x34   : > { %v916_v33 = vshrl.u32 %v915_v28, 7  ;;  %vm929_vm5 = vcmp.lt.s32.totalorder %v915_v28, 256  ;;  %v753_v40 = vadd.f32 %v752_v38, %v1635_v31  ;;  %v761_v41 = vadd.f32 %v760_v39, %v1625_v23  ;;  %s1320_s13 = scalar_lea.vmem %s1319_s5, 128  ;;  %p1321_p1 = scmp.lt.s32.totalorder %s1704_s30, %s1319_s5 }
  0x35   : > { %v786_v20 = vrot.slane %v785_v18, 2  ;;  %v778_v21 = vrot.slane %v777_v19, 2  ;;  %v914_v32 = vunpack.c.0.s8 %v913_v27  ;;  %p1317_p0 = pneg %p1316_p13  ;;  %p1322_p2 = scmp.lt.s32.totalorder %s1320_s13, %s1314_s25 }
  0x36   : > { %1198 = vmatpush1.msk.msra.mxu1 %vm588_vm1, %v580_v9  ;;  %1201 = vmatpush1.msk.msra.mxu0 %vm670_vm2, %v568_v13  ;;  %v754_v42 = vrot.slane %v753_v40, 2  ;;  %v762_v43 = vrot.slane %v761_v41, 2 }
  0x37   : > { %1199 = vmatmul.mubr.msk.f32.vlgmr.msra.gmra.mrb[0].mxu1 %vm584_vm3, %v583_v12  ;;  %1234 = vmatprep.subr.bf16.mxu1 %v1233_v10  ;;  %v787_v22 = vmax.f32 %v785_v18, %v786_v20  ;;  %v779_v24 = vmax.f32 %v777_v19, %v778_v21  ;;  %v917_v36 = vsub.s32 %v914_v32, %v916_v33  ;;  %p1323_p3 = por %p1322_p2, %p1321_p1 }
  0x38   : > { %1236 = vmatpush1.bf16.msra.mxu1 %v1235_v11  ;;  %1202 = vmatmul.mubr.msk.f32.vlgmr.msra.gmra.mrb[0].mxu0 %vm666_vm4, %v582_v14  ;;  %v755_v44 = vadd.f32 %v754_v42, %v753_v40  ;;  %v763_v45 = vadd.f32 %v762_v43, %v761_v41 }
  0x39   : > { %1203 = vmatprep.subr.msk.mxu1 %vm588_vm1, %v549_v57  ;;  %890 = vmatprep.mubr.f32.mxu1 %v1454_v0  ;;  %v788_v25 = vrot.slane %v787_v22, 1  ;;  %v780_v0 = vrot.slane %v779_v24, 1  ;;  %p1324_p5 = pnand %p1323_p3, %p1317_p0 }
  0x3a   : > { %v756_v46 = vrot.slane %v755_v44, 1  ;;  %v764_v47 = vrot.slane %v763_v45, 1 }
  0x3b   : > { %v781_v29 = vmax.f32 %v779_v24, %v780_v0  ;;  %v789_v30 = vmax.f32 %v787_v22, %v788_v25 }
  0x3c   : > { %1204 = vmatpush1.msk.msra.mxu1 %vm588_vm1, %v548_v63  ;;  %v757_v48 = vadd.f32 %v756_v46, %v755_v44  ;;  %v765_v49 = vadd.f32 %v764_v47, %v763_v45 }
  0x3d   : > { %1205 = vmatmul.mubr.msk.f32.vlgmr.msra.gmra.mrb[2].mxu1 %vm584_vm3, %v748_v15  ;;  %v911_v35 = vcombine.low %v781_v29, %v789_v30 }
  0x3e   : > { %v790_v50 = vadd.f32 9.0, %v757_v48  ;;  %v791_v51 = vadd.f32 9.0, %v765_v49 }
  0x3f   : > { %v918_v37 = vrot.slane %v911_v35, %v917_v36 }
  0x40   : > { %1310 = vrcp.f32 %v790_v50 }
  0x41   : > { %v925_v34 = vrot.slane %v918_v37, %v917_v36  ;;  %1312 = vrcp.f32 %v791_v51 }
  0x43   : > { %931 = vst.msk [vmem:[%s1682_s15] sm:$0x3] %vm929_vm5, %v925_v34  ;;  %s938_s15 = scalar_lea.sflag [#allocation5], %s1693_s28 }
  0x4a   : > { %v1311_v52 = vpop.eup %1310 }
  0x4b   : > { %v1313_v31 = vpop.eup %1312  ;;  %v793_v55 = vmul.f32 18.0, %v1311_v52 }
  0x4c   : > { %v795_v57 = vmul.f32 18.0, %v1313_v31 }
  0x9a   : > { %v815_v23 = vpop.permute.xlu0 %814 }
  0x9e   : > { %v802_v62 = vpop.permute.xlu0 %801 }
 0x10a   : > { %v661_v53 = vpop.f32.mrb[0].mxu1 }
 0x10b   : > { %v663_v54 = vpop.f32.mrb[1].mxu1  ;;  %v743_v56 = vpop.f32.mrb[0].mxu0 }
 0x10c   : > { %v744_v58 = vadd.f32 %v743_v56, %v661_v53  ;;  %v745_v59 = vpop.f32.mrb[1].mxu0 }
 0x10d   : > { %v746_v60 = vadd.f32 %v745_v59, %v663_v54 }
 0x10e   : > { %v796_v61 = vmul.f32 %v793_v55, %v744_v58 }
 0x10f   : > { %v797_v63 = vmul.f32 %v795_v57, %v746_v60 }
 0x110   : > { %v892_v1 = vpop.f32.mrb[2].mxu1  ;;  %v804_v2 = vadd.f32 %v802_v62, %v796_v61 }
 0x111   : > { %v893_v3 = vadd.f32 %v892_v1, %v815_v23  ;;  %v894_v4 = vpop.f32.mrb[3].mxu1  ;;  %v805_v5 = vadd.f32 %v802_v62, %v797_v63 }
 0x112   : > { %v895_v6 = vadd.f32 %v894_v4, %v815_v23 }
 0x113   : > { %v808_v7 = vcombine.low %v804_v2, %v805_v5 }
 0x114   : > { %v899_v8 = vcombine.low %v893_v3, %v895_v6 }
 0x115   : > { %810 = vst [vmem:[%s480_s0] sm:$0xff] %v808_v7 }
 0x116   : > { %1206 = vst.sshfl [vmem:[%s487_s24] sm:$0x33 pattern:$0x76325410] %v899_v8 }
 0x117   : > { %1327 = shalt.err (!%p1324_p5)
}
 0x118   : > { %s1328_s0 = scalar_lea.hbm %s1699_s23, 64  ;;  %s1332_s12 = scalar_lea.hbm %s1823_s10, 128 }
 0x119   : > { %p1329_p6 = scmp.ne.s32.totalorder %s1699_s23, %s1328_s0  ;;  %p1333_p10 = scmp.lt.u32.totalorder %s1699_s23, %s1823_s10 }
 0x11a   : > { %p1334_p11 = scmp.lt.u32.totalorder %s1332_s12, %s1328_s0  ;;  %p1336_p13 = scmp.lt.u32.totalorder %s1328_s0, %s1699_s23 }
 0x11b   : > { %p1330_p7 = pnand %p1329_p6, %p1562_p4 }
 0x11c   : > { %p1335_p12 = por %p1334_p11, %p1333_p10 }
 0x11d   : > { %p1331_p9 = pneg %p1330_p7 }
 0x11e   : > { %p1337_p0 = por %p1336_p13, %p1335_p12 }
 0x120   : > { %p1338_p1 = pnand %p1337_p0, %p1331_p9 }
 0x122   : > { %1341 = shalt.err (!%p1338_p1)
}
 0x123   : > { %1242 = dma.vmem_to_hbm [thread:$0]  (%p1562_p4), %s1704_s30, 64, %s1699_s23, %s938_s15  }
 0x124   : > { %s933_s25 = scalar_lea.sflag [#allocation3], %s1679_s21  ;;  %s1342_s4 = scalar_lea.vmem %s1711_s1, 128 }
 0x125   : > { %p1343_p2 = scmp.ne.s32.totalorder %s1711_s1, %s1342_s4  ;;  %s1458_s5 = smov [#allocation2]  }
 0x126   : > { %s1346_s13 = sshll.u32 %s1458_s5, 4  ;;  %s1347_s13 = int_to_ptr.vmem [resolvable:$false] %s1346_s13 }
 0x127   : > { %p1344_p3 = pnand %p1343_p2, %p1562_p4  ;;  %s1348_s0 = scalar_lea.vmem %s1347_s13, 256 }
 0x128   : > { %p1349_p6 = scmp.lt.s32.totalorder %s1711_s1, %s1347_s13  ;;  %p1350_p7 = scmp.lt.s32.totalorder %s1348_s0, %s1342_s4 }
 0x129   : > { %p1345_p5 = pneg %p1344_p3 }
 0x12a   : > { %p1351_p9 = por %p1350_p7, %p1349_p6 }
 0x12c   : > { %p1352_p10 = pnand %p1351_p9, %p1345_p5 }
 0x12e   : > { %1355 = shalt.err (!%p1352_p10)
}
 0x12f   : > { %s1356_s21 = scalar_lea.hbm %s1709_s26, 128  ;;  %s1360_s2 = scalar_lea.hbm %s1822_s9, 256 }
 0x130   : > { %p1357_p11 = scmp.ne.s32.totalorder %s1709_s26, %s1356_s21  ;;  %p1361_p0 = scmp.lt.u32.totalorder %s1709_s26, %s1822_s9 }
 0x131   : > { %p1362_p1 = scmp.lt.u32.totalorder %s1360_s2, %s1356_s21  ;;  %p1364_p3 = scmp.lt.u32.totalorder %s1356_s21, %s1709_s26 }
 0x132   : > { %p1358_p12 = pnand %p1357_p11, %p1562_p4 }
 0x133   : > { %p1363_p2 = por %p1362_p1, %p1361_p0 }
 0x134   : > { %p1359_p13 = pneg %p1358_p12 }
 0x135   : > { %p1365_p5 = por %p1364_p3, %p1363_p2 }
 0x137   : > { %p1366_p6 = pnand %p1365_p5, %p1359_p13 }
 0x139   : > { %1369 = shalt.err (!%p1366_p6)
}
 0x13a   : > { %1241 = dma.vmem_to_hbm [thread:$0]  (%p1562_p4), %s1711_s1, 128, %s1709_s26, %s933_s25  }
 0x13b   : > { %s1370_s14 = scalar_lea.vmem %s1718_s3, 32  ;;  %s1459_s16 = smov [#allocation6]  }
 0x13c   : > { %p1371_p7 = scmp.ne.s32.totalorder %s1718_s3, %s1370_s14  ;;  %s1374_s4 = sshll.u32 %s1459_s16, 4  ;;  %s1375_s4 = int_to_ptr.vmem [resolvable:$false] %s1374_s4 }
 0x13d   : > { %s1376_s5 = scalar_lea.vmem %s1375_s4, 64  ;;  %p1377_p11 = scmp.lt.s32.totalorder %s1718_s3, %s1375_s4 }
 0x13e   : > { %p1372_p9 = pnand %p1371_p7, %p1562_p4  ;;  %p1378_p12 = scmp.lt.s32.totalorder %s1376_s5, %s1370_s14 }
 0x140   : > { %p1373_p10 = pneg %p1372_p9  ;;  %p1379_p13 = por %p1378_p12, %p1377_p11 }
 0x142   : > { %p1380_p0 = pnand %p1379_p13, %p1373_p10 }
 0x144   : > { %1383 = shalt.err (!%p1380_p0)
}
 0x145   : > { %s1384_s1 = scalar_lea.hbm %s1716_s20, 32  ;;  %s1388_s13 = scalar_lea.hbm %s1824_s11, 64 }
 0x146   : > { %p1385_p1 = scmp.ne.s32.totalorder %s1716_s20, %s1384_s1  ;;  %p1389_p5 = scmp.lt.u32.totalorder %s1716_s20, %s1824_s11 }
 0x147   : > { %p1390_p6 = scmp.lt.u32.totalorder %s1388_s13, %s1384_s1  ;;  %p1392_p9 = scmp.lt.u32.totalorder %s1384_s1, %s1716_s20 }
 0x148   : > { %p1386_p2 = pnand %p1385_p1, %p1562_p4 }
 0x149   : > { %p1391_p7 = por %p1390_p6, %p1389_p5 }
 0x14a   : > { %p1387_p3 = pneg %p1386_p2 }
 0x14b   : > { %p1393_p10 = por %p1392_p9, %p1391_p7 }
 0x14d   : > { %p1394_p11 = pnand %p1393_p10, %p1387_p3 }
 0x14f   : > { %1397 = shalt.err (!%p1394_p11)
}
 0x150   : > { %1243 = dma.vmem_to_hbm [thread:$0]  (%p1562_p4), %s1718_s3, 32, %s1716_s20, %s938_s15  }
 0x151 PF: > { %p1257_p12 = scmp.ge.s32.totalorder %s1452_s22, 2  ;;  %s1003_s23 = sand.u32 1, %s1432_s17  }
 0x152   : > { %s1004_s30 = scalar_lea.sflag [#allocation3], %s1003_s23 }
 0x153   : > { %p1248_p13 = pnand %p1257_p12, %p1571_p8 }
 0x155   : > { %1423 = dma.done.wait (!%p1248_p13), %s1004_s30, 128  }
 0x156   : > { %1425 = vsyncadd (!%p1248_p13), %s1004_s30, 4294967168  ;;  %s1847_s2 = sadd.s32 4294967294, %s1452_s22  }
 0x157   : > { %s1012_s24 = sand.u32 1, %s1847_s2  }
 0x158   : > { %s1013_s27 = scalar_lea.sflag [#allocation5], %s1012_s24 }
 0x159   : > { %1427 = dma.done.wait (!%p1248_p13), %s1013_s27, 96  }
 0x15a   : > { %1429 = vsyncadd (!%p1248_p13), %s1013_s27, 4294967200  ;;  %s28_s22 = sadd.s32 1, %s1452_s22   ;;  %s1848_s3 = sld [smem:[#allocation11_spill]] }
 0x15b   : > { %p25_p4 = scmp.ge.s32.totalorder %s28_s22, 4   ;;  %s1849_s20 = sld [smem:[#allocation9_spill]] }
 0x15c   : > { %s1850_s21 = sld [smem:[#allocation10_spill]]  ;;  %s1851_s17 = smov %s1436_s18 }
 0x15d   : > { %s1852_s18 = smov %s1440_s19  ;;  %27 = sbr.rel (!%p25_p4) target bundleno = 13 (0xd), region = 132 }
 0x160   : > { %s1853_s19 = smov %s1848_s3 }
 0x164   :  { %1027 = vsyncpa [#allocation3], 1 }
 0x165   :  { %1029 = vsyncpa [#allocation3 + $0x1], 1 }
 0x166   :  { %1030 = vsyncpa [#allocation5], 1 }
 0x167   :  { %1032 = vsyncpa [#allocation5 + $0x1], 1 }

</bundles_post_ra>
